<compile_context>
chip_gen: v5e
topology: v5e:2x2
jax: 0.10.0
libtpu: 0.0.40
codegen_flags: <defaults>
</compile_context>

<pallas_src>
import jax
import jax.numpy as jnp
from jax.experimental import pallas as pl
from jax.experimental.pallas import tpu as pltpu

_H1, _H2, _H3, _OUT = 20, 10, 5, 1


def _mlp_kernel(x_ref,
                w1_ref, b1_ref,
                w2_ref, b2_ref,
                w3_ref, b3_ref,
                w4_ref, b4_ref,
                o_ref):
    # Whole hot path (4 matmuls + 3 ReLUs + bias adds) for one batch tile.
    # x and w1 share a dtype (possibly bf16); every matmul accumulates in f32.
    h = jnp.dot(x_ref[...], w1_ref[...],
                preferred_element_type=jnp.float32) + b1_ref[...]
    h = jnp.maximum(h, 0.0)

    h = jnp.dot(h, w2_ref[...],
                preferred_element_type=jnp.float32) + b2_ref[...]
    h = jnp.maximum(h, 0.0)

    h = jnp.dot(h, w3_ref[...],
                preferred_element_type=jnp.float32) + b3_ref[...]
    h = jnp.maximum(h, 0.0)

    # Final Linear(5, 1): contract w4 (1, 5) with h (T, 5) over the feature
    # axis so the result comes out as (1, T) -- batch on the lane axis ->
    # dense full-lane stores instead of a 1-lane-wide masked column.
    out = jax.lax.dot_general(
        w4_ref[...], h,
        dimension_numbers=(((1,), (1,)), ((), ())),
        preferred_element_type=jnp.float32) + b4_ref[...]

    o_ref[...] = out.reshape(o_ref.shape).astype(o_ref.dtype)


def _vmem_capacity_bytes():
    """Chip-aware VMEM capacity; conservative (v7x per-TC) fallback."""
    try:
        info = pltpu.get_tpu_info()
        cap = getattr(info, "vmem_capacity_bytes", None)
        if cap:
            return int(cap)
    except Exception:
        pass
    return 64 * 1024 * 1024


def _choose_batch_tile(B, input_size, x_itemsize, vmem_limit_bytes,
                       target_x_tile_bytes=4 * 1024 * 1024):
    """Byte-driven batch-tile size (multiple of 8 rows).

    Per-row VMEM held by one grid step:
      * 2 double-buffered x tiles          : 2 * input_size * x_itemsize
      * f32 activations (20 + 10 + 5)      : 140 B
      * double-buffered f32 output element : 8 B
    Keeps that inside ~60% of vmem_limit_bytes (headroom for resident weights,
    spill area, compiler scratch).  Targets ~4 MiB of x per tile so the fixed
    per-grid-step cost is amortized, and caps at B_pad/2 when B_pad >= 16 so
    both v7x TensorCores get work.
    """
    per_row = (2 * input_size * x_itemsize
               + (_H1 + _H2 + _H3) * 4
               + 2 * 4)
    budget = int(vmem_limit_bytes * 0.6)
    max_rows = max(8, budget // max(1, per_row))
    target_rows = max(8, target_x_tile_bytes // max(1, input_size * x_itemsize))

    t = min(target_rows, max_rows)
    b_pad8 = ((B + 7) // 8) * 8
    t = min(t, b_pad8)
    if b_pad8 >= 16:
        t = min(t, b_pad8 // 2)          # >= 2 tiles -> both TCs busy on v7x
    return max(8, (t // 8) * 8)


def simple_regression_forward(x, params):
    """x: (B, input_size), f32 or bf16. Returns (B, 1) float32."""
    B, input_size = x.shape
    w1, b1 = params["w1"], params["b1"]
    w2, b2 = params["w2"], params["b2"]
    w3, b3 = params["w3"], params["b3"]
    w4, b4 = params["w4"], params["b4"]

    # bf16 x path: cast w1 once here so the first dot is a native
    # bf16 x bf16 -> f32 MXU matmul (biases stay f32; accumulation is f32).
    if w1.dtype != x.dtype:
        w1 = w1.astype(x.dtype)

    cap = _vmem_capacity_bytes()
    # <= ~48 MiB on 64-MiB v7x, up to 96 MiB on 128-MiB v5e/v6e.
    vmem_limit = min(cap * 3 // 4, 96 * 1024 * 1024)

    T = _choose_batch_tile(B, input_size, jnp.dtype(x.dtype).itemsize,
                           vmem_limit)
    num_tiles = pl.cdiv(B, T)
    B_pad = num_tiles * T
    if B_pad != B:
        x = jnp.pad(x, ((0, B_pad - B), (0, 0)))

    # Weights/biases: full-array blocks with constant index_maps -> stay
    # VMEM-resident across all grid steps (no re-DMA per step).
    def resident(a):
        return pl.BlockSpec(a.shape, lambda i, _nd=a.ndim: (0,) * _nd)

    out = pl.pallas_call(
        _mlp_kernel,
        out_shape=jax.ShapeDtypeStruct((num_tiles, 1, T), jnp.float32),
        grid=(num_tiles,),
        in_specs=[
            # Streamed, default double-buffered x row tiles (large tiles
            # already hide the DMA; extra buffers would just eat VMEM).
            pl.BlockSpec((T, input_size), lambda i: (i, 0)),
            resident(w1), resident(b1),
            resident(w2), resident(b2),
            resident(w3), resident(b3),
            resident(w4), resident(b4),
        ],
        # Lane-dense output slab: one (1, T) row per batch tile; block shape
        # equals the full minor dims so it is layout-legal for any T.
        out_specs=pl.BlockSpec((1, 1, T), lambda i: (i, 0, 0)),
        compiler_params=pltpu.CompilerParams(
            dimension_semantics=("parallel",),   # shard batch tiles across TCs
            vmem_limit_bytes=vmem_limit,
        ),
    )(x, w1, b1, w2, b2, w3, b3, w4, b4)

    # TODO(synk): if the consumer accepts a (B,)/(1,B) result, this tiny
    # relayout back to the PyTorch (B, 1) column shape could be skipped.
    return out.reshape(B_pad, 1)[:B]


def init_params(input_size, key):
    """Deterministic init matching nn.Linear shapes.

    Layers 1-3 are stored transposed, (in, out), so the kernel does x @ W + b.
    Layer 4 is stored in PyTorch (out, in) = (1, 5) layout so the kernel can
    contract over features and emit a lane-dense (1, T) result directly.
    """
    dims = [(input_size, _H1), (_H1, _H2), (_H2, _H3), (_H3, _OUT)]
    params = {}
    for i, (fan_in, fan_out) in enumerate(dims, start=1):
        key, kw, kb = jax.random.split(key, 3)
        bound = 1.0 / float(fan_in) ** 0.5  # PyTorch default uniform bound
        w_shape = (fan_in, fan_out) if i < 4 else (fan_out, fan_in)
        params[f"w{i}"] = jax.random.uniform(
            kw, w_shape, jnp.float32, -bound, bound)
        params[f"b{i}"] = jax.random.uniform(
            kb, (1, fan_out), jnp.float32, -bound, bound)
    return params


def reference_forward(x, p):
    h = jnp.maximum(x @ p["w1"] + p["b1"], 0.0)
    h = jnp.maximum(h @ p["w2"] + p["b2"], 0.0)
    h = jnp.maximum(h @ p["w3"] + p["b3"], 0.0)
    return h @ p["w4"].T + p["b4"]


if __name__ == "__main__":
    key = jax.random.PRNGKey(0)
    key, kx = jax.random.split(key)

    batch, input_size = 8, 32
    x = jax.random.normal(kx, (batch, input_size), jnp.float32)
    params = init_params(input_size, key)

    # Small single-tile case.
    out = jax.block_until_ready(simple_regression_forward(x, params))
    ref = reference_forward(x, params)
    assert out.shape == (batch, 1)
    assert jnp.allclose(out, ref, atol=1e-4, rtol=1e-4)

    # Multi-tile grid path: batch=40 -> tile capped at B_pad/2 (>=2 grid steps
    # for the v7x 2-TC split), padding to a tile multiple and sliced off.
    key, kx2 = jax.random.split(key)
    x2 = jax.random.normal(kx2, (40, input_size), jnp.float32)
    out2 = jax.block_until_ready(simple_regression_forward(x2, params))
    ref2 = reference_forward(x2, params)
    assert out2.shape == (40, 1)
    assert jnp.allclose(out2, ref2, atol=1e-4, rtol=1e-4)

    # bf16 HBM representation of x (halves streamed bytes): w1 is cast once in
    # the wrapper so the first matmul is native bf16 x bf16 -> f32 on the MXU.
    x_bf16 = x.astype(jnp.bfloat16)
    out_bf = jax.block_until_ready(simple_regression_forward(x_bf16, params))
    assert out_bf.shape == (batch, 1)
    assert jnp.allclose(out_bf, ref, atol=5e-2, rtol=5e-2)

    print("KERNEL_OK")
</pallas_src>

<mosaic_0001>
module attributes {stable_mosaic.version = 11 : i64} {
  func.func @_mlp_kernel(%arg0: i32, %arg1: memref<8x32xf32, #tpu.memory_space<vmem>>, %arg2: memref<32x20xf32, #tpu.memory_space<vmem>>, %arg3: memref<1x20xf32, #tpu.memory_space<vmem>>, %arg4: memref<20x10xf32, #tpu.memory_space<vmem>>, %arg5: memref<1x10xf32, #tpu.memory_space<vmem>>, %arg6: memref<10x5xf32, #tpu.memory_space<vmem>>, %arg7: memref<1x5xf32, #tpu.memory_space<vmem>>, %arg8: memref<1x5xf32, #tpu.memory_space<vmem>>, %arg9: memref<1x1xf32, #tpu.memory_space<vmem>>, %arg10: memref<1x1x8xf32, #tpu.memory_space<vmem>>) attributes {dimension_semantics = [#tpu.dimension_semantics<parallel>], iteration_bounds = array<i64: 1>, scalar_prefetch = 0 : i64, scratch_operands = 0 : i64, tpu.core_type = #tpu.core_type<tc>, window_params = [{transform_indices = @transform_0, window_bounds = array<i64: 8, 32>}, {pipeline_mode = #tpu.pipeline_mode<synchronous>, transform_indices = @transform_1, window_bounds = array<i64: 32, 20>}, {pipeline_mode = #tpu.pipeline_mode<synchronous>, transform_indices = @transform_2, window_bounds = array<i64: 1, 20>}, {pipeline_mode = #tpu.pipeline_mode<synchronous>, transform_indices = @transform_3, window_bounds = array<i64: 20, 10>}, {pipeline_mode = #tpu.pipeline_mode<synchronous>, transform_indices = @transform_4, window_bounds = array<i64: 1, 10>}, {pipeline_mode = #tpu.pipeline_mode<synchronous>, transform_indices = @transform_5, window_bounds = array<i64: 10, 5>}, {pipeline_mode = #tpu.pipeline_mode<synchronous>, transform_indices = @transform_6, window_bounds = array<i64: 1, 5>}, {pipeline_mode = #tpu.pipeline_mode<synchronous>, transform_indices = @transform_7, window_bounds = array<i64: 1, 5>}, {pipeline_mode = #tpu.pipeline_mode<synchronous>, transform_indices = @transform_8, window_bounds = array<i64: 1, 1>}, {transform_indices = @transform_9, window_bounds = array<i64: 1, 1, 8>}]} {
    %c0 = arith.constant 0 : index
    %c0_0 = arith.constant 0 : index
    %0 = vector.load %arg1[%c0, %c0_0] : memref<8x32xf32, #tpu.memory_space<vmem>>, vector<8x32xf32>
    %c0_1 = arith.constant 0 : index
    %c0_2 = arith.constant 0 : index
    %1 = vector.load %arg2[%c0_1, %c0_2] : memref<32x20xf32, #tpu.memory_space<vmem>>, vector<32x20xf32>
    %cst = arith.constant dense<0.000000e+00> : vector<8x20xf32>
    %2 = tpu.matmul %0, %1, %cst {dimension_numbers = #tpu.dot_dimension_numbers<[1], [0], [0], [1], [0, 0, 1, 1], [], []>} : vector<8x32xf32>, vector<32x20xf32>, vector<8x20xf32> -> vector<8x20xf32>
    %c0_3 = arith.constant 0 : index
    %c0_4 = arith.constant 0 : index
    %3 = vector.load %arg3[%c0_3, %c0_4] : memref<1x20xf32, #tpu.memory_space<vmem>>, vector<1x20xf32>
    %4 = vector.broadcast %3 : vector<1x20xf32> to vector<8x20xf32>
    %5 = arith.addf %2, %4 : vector<8x20xf32>
    %cst_5 = arith.constant 0.000000e+00 : f32
    %6 = vector.broadcast %cst_5 : f32 to vector<8x20xf32>
    %7 = arith.maximumf %5, %6 : vector<8x20xf32>
    %c0_6 = arith.constant 0 : index
    %c0_7 = arith.constant 0 : index
    %8 = vector.load %arg4[%c0_6, %c0_7] : memref<20x10xf32, #tpu.memory_space<vmem>>, vector<20x10xf32>
    %cst_8 = arith.constant dense<0.000000e+00> : vector<8x10xf32>
    %9 = tpu.matmul %7, %8, %cst_8 {dimension_numbers = #tpu.dot_dimension_numbers<[1], [0], [0], [1], [0, 0, 1, 1], [], []>} : vector<8x20xf32>, vector<20x10xf32>, vector<8x10xf32> -> vector<8x10xf32>
    %c0_9 = arith.constant 0 : index
    %c0_10 = arith.constant 0 : index
    %10 = vector.load %arg5[%c0_9, %c0_10] : memref<1x10xf32, #tpu.memory_space<vmem>>, vector<1x10xf32>
    %11 = vector.broadcast %10 : vector<1x10xf32> to vector<8x10xf32>
    %12 = arith.addf %9, %11 : vector<8x10xf32>
    %cst_11 = arith.constant 0.000000e+00 : f32
    %13 = vector.broadcast %cst_11 : f32 to vector<8x10xf32>
    %14 = arith.maximumf %12, %13 : vector<8x10xf32>
    %c0_12 = arith.constant 0 : index
    %c0_13 = arith.constant 0 : index
    %15 = vector.load %arg6[%c0_12, %c0_13] : memref<10x5xf32, #tpu.memory_space<vmem>>, vector<10x5xf32>
    %cst_14 = arith.constant dense<0.000000e+00> : vector<8x5xf32>
    %16 = tpu.matmul %14, %15, %cst_14 {dimension_numbers = #tpu.dot_dimension_numbers<[1], [0], [0], [1], [0, 0, 1, 1], [], []>} : vector<8x10xf32>, vector<10x5xf32>, vector<8x5xf32> -> vector<8x5xf32>
    %c0_15 = arith.constant 0 : index
    %c0_16 = arith.constant 0 : index
    %17 = vector.load %arg7[%c0_15, %c0_16] : memref<1x5xf32, #tpu.memory_space<vmem>>, vector<1x5xf32>
    %18 = vector.broadcast %17 : vector<1x5xf32> to vector<8x5xf32>
    %19 = arith.addf %16, %18 : vector<8x5xf32>
    %cst_17 = arith.constant 0.000000e+00 : f32
    %20 = vector.broadcast %cst_17 : f32 to vector<8x5xf32>
    %21 = arith.maximumf %19, %20 : vector<8x5xf32>
    %c0_18 = arith.constant 0 : index
    %c0_19 = arith.constant 0 : index
    %22 = vector.load %arg8[%c0_18, %c0_19] : memref<1x5xf32, #tpu.memory_space<vmem>>, vector<1x5xf32>
    %cst_20 = arith.constant dense<0.000000e+00> : vector<1x8xf32>
    %23 = tpu.matmul %22, %21, %cst_20 {dimension_numbers = #tpu.dot_dimension_numbers<[1], [1], [0], [0], [0, 0, 1, 0], [], []>} : vector<1x5xf32>, vector<8x5xf32>, vector<1x8xf32> -> vector<1x8xf32>
    %c0_21 = arith.constant 0 : index
    %c0_22 = arith.constant 0 : index
    %24 = vector.load %arg9[%c0_21, %c0_22] : memref<1x1xf32, #tpu.memory_space<vmem>>, vector<1x1xf32>
    %25 = vector.broadcast %24 : vector<1x1xf32> to vector<1x8xf32>
    %26 = arith.addf %23, %25 : vector<1x8xf32>
    %27 = vector.shape_cast %26 : vector<1x8xf32> to vector<1x1x8xf32>
    %c0_23 = arith.constant 0 : index
    %c0_24 = arith.constant 0 : index
    %c0_25 = arith.constant 0 : index
    %28 = vector.load %arg10[%c0_23, %c0_24, %c0_25] : memref<1x1x8xf32, #tpu.memory_space<vmem>>, vector<1x1x8xf32>
    tpu.vector_store %arg10[%c0_23, %c0_24, %c0_25], %27 {strides = array<i32>} : memref<1x1x8xf32, #tpu.memory_space<vmem>>, vector<1x1x8xf32>,
    return
  }
  func.func @transform_0(%arg0: i32) -> (i32, i32) {
    %c0_i32 = arith.constant 0 : i32
    %c0_i32_0 = arith.constant 0 : i32
    return %arg0, %c0_i32 : i32, i32
  }
  func.func @transform_1(%arg0: i32) -> (i32, i32) {
    %c0_i32 = arith.constant 0 : i32
    %c0_i32_0 = arith.constant 0 : i32
    %c0_i32_1 = arith.constant 0 : i32
    return %c0_i32, %c0_i32_0 : i32, i32
  }
  func.func @transform_2(%arg0: i32) -> (i32, i32) {
    %c0_i32 = arith.constant 0 : i32
    %c0_i32_0 = arith.constant 0 : i32
    %c0_i32_1 = arith.constant 0 : i32
    return %c0_i32, %c0_i32_0 : i32, i32
  }
  func.func @transform_3(%arg0: i32) -> (i32, i32) {
    %c0_i32 = arith.constant 0 : i32
    %c0_i32_0 = arith.constant 0 : i32
    %c0_i32_1 = arith.constant 0 : i32
    return %c0_i32, %c0_i32_0 : i32, i32
  }
  func.func @transform_4(%arg0: i32) -> (i32, i32) {
    %c0_i32 = arith.constant 0 : i32
    %c0_i32_0 = arith.constant 0 : i32
    %c0_i32_1 = arith.constant 0 : i32
    return %c0_i32, %c0_i32_0 : i32, i32
  }
  func.func @transform_5(%arg0: i32) -> (i32, i32) {
    %c0_i32 = arith.constant 0 : i32
    %c0_i32_0 = arith.constant 0 : i32
    %c0_i32_1 = arith.constant 0 : i32
    return %c0_i32, %c0_i32_0 : i32, i32
  }
  func.func @transform_6(%arg0: i32) -> (i32, i32) {
    %c0_i32 = arith.constant 0 : i32
    %c0_i32_0 = arith.constant 0 : i32
    %c0_i32_1 = arith.constant 0 : i32
    return %c0_i32, %c0_i32_0 : i32, i32
  }
  func.func @transform_7(%arg0: i32) -> (i32, i32) {
    %c0_i32 = arith.constant 0 : i32
    %c0_i32_0 = arith.constant 0 : i32
    %c0_i32_1 = arith.constant 0 : i32
    return %c0_i32, %c0_i32_0 : i32, i32
  }
  func.func @transform_8(%arg0: i32) -> (i32, i32) {
    %c0_i32 = arith.constant 0 : i32
    %c0_i32_0 = arith.constant 0 : i32
    %c0_i32_1 = arith.constant 0 : i32
    return %c0_i32, %c0_i32_0 : i32, i32
  }
  func.func @transform_9(%arg0: i32) -> (i32, i32, i32) {
    %c0_i32 = arith.constant 0 : i32
    %c0_i32_0 = arith.constant 0 : i32
    %c0_i32_1 = arith.constant 0 : i32
    return %arg0, %c0_i32, %c0_i32_0 : i32, i32, i32
  }
}

</mosaic_0001>

<bundles_post_ra>
// kernel: tpu_custom_call.1
= control target key start
LH: loop header
LB: loop body
LE: loop exit
PB: predicated region body
PF: predicated region fallthrough
CT: control target
= control target key end

     0   :  { %s332_s0 = inlined_call_operand.vmem [shape: f32[8,32], index: 0, kind: input, shape index: {}]   ;;  %s333_s1 = inlined_call_operand.vmem [shape: f32[32,20], index: 1, kind: input, shape index: {}]   ;;  %s334_s2 = inlined_call_operand.vmem [shape: f32[1,20], index: 2, kind: input, shape index: {}]   ;;  %s335_s3 = inlined_call_operand.vmem [shape: f32[20,10], index: 3, kind: input, shape index: {}]   ;;  %s336_s4 = inlined_call_operand.vmem [shape: f32[1,10], index: 4, kind: input, shape index: {}]   ;;  %s337_s5 = inlined_call_operand.vmem [shape: f32[10,5], index: 5, kind: input, shape index: {}]   ;;  %s338_s6 = inlined_call_operand.vmem [shape: f32[1,5], index: 6, kind: input, shape index: {}]   ;;  %s339_s7 = inlined_call_operand.vmem [shape: f32[1,5], index: 7, kind: input, shape index: {}]   ;;  %s340_s8 = inlined_call_operand.<no memory space> [shape: f32[1,1], index: 8, kind: input, shape index: {}]   ;;  %s341_s9 = inlined_call_operand.hbm [shape: f32[1,1,8], index: 9, kind: output, shape index: {}]  }
   0x1   :  { %v14_v0 = vstv %s340_s8 }
   0x2   :  { %15 = vst [vmem:[#allocation2] sm:$0x1] %v14_v0 }
   0x3   :  { %v39_v1 = vld [vmem:[%s333_s1 + $0x18] sm:$0xff]  ;;  %v38_v2 = vld [vmem:[%s333_s1 + $0x10] sm:$0xff]  ;;  %v37_v3 = vld [vmem:[%s333_s1 + $0x8] sm:$0xff] }
   0x4   :  { %60 = vmatpush.msra.mxu0 %v39_v1 }
   0x6   :  { %61 = vmatpush.msra.mxu0 %v38_v2 }
   0x7   :  { %16 = vsyncpa [#allocation4], 0  ;;  %v36_v4 = vld [vmem:[%s333_s1] sm:$0xff]  ;;  %vm44_vm0 = vcmask 261120   ;;  %v71_v6 = vld [vmem:[%s335_s3 + $0x10] sm:$0xf] }
   0x8   :  { %62 = vmatpush.msra.mxu0 %v37_v3  ;;  %v35_v5 = vld [vmem:[%s332_s0] sm:$0xff]  ;;  %vm80_vm1 = vcmask 1043456   ;;  %v70_v7 = vld [vmem:[%s335_s3 + $0x8] sm:$0xff]  ;;  %vm76_vm2 = vcmask 162816   ;;  %vm115_vm3 = vcmask 1041408   ;;  %vm111_vm4 = vcmask 80896  }
   0x9   :  { %194 = vmatpush.msk.msra.mxu1 %vm80_vm1, %v71_v6  ;;  %v69_v8 = vld [vmem:[%s335_s3] sm:$0xff]  ;;  %v106_v13 = vld [vmem:[%s337_s5 + $0x8] sm:$0x3]  ;;  %v232_v20 = vmov 0   ;;  %vm148_vm5 = vcmask 39936   ;;  %s233_s11 = smov [#allocation3]  }
   0xa   :  { %63 = vmatpush.msra.mxu0 %v36_v4  ;;  %v203_v9 = vld [vmem:[%s334_s2] ss:$0 sm:$0xff]  ;;  %196 = vmatpush.msk.msra.mxu2 %vm115_vm3, %v106_v13  ;;  %s182_s12 = sshll.u32 %s233_s11, 4  ;;  %s184_s15 = sshll.u32 %s341_s9, 4  ;;  %vm175_vm6 = vcmask 57344   ;;  %s183_s12 = int_to_ptr.vmem [resolvable:$true] %s182_s12  ;;  %s185_s15 = int_to_ptr.hbm [resolvable:$true] %s184_s15 }
   0xb   :  { %193 = vmatmul.msk.f32.vlgmr.msra.gmra.mxu0 %vm44_vm0, %v35_v5  ;;  %98 = vmatpush.msra.mxu1 %v70_v7  ;;  %v105_v14 = vld [vmem:[%s337_s5] sm:$0xff] }
   0xc   :  { %134 = vmatpush.msra.mxu2 %v105_v14  ;;  %v204_v15 = vld [vmem:[%s336_s4] ss:$0 sm:$0xff]  ;;  %202 = vset.pattern.permute.xlu0 %v232_v20 }
   0xd   :  { %99 = vmatpush.msra.mxu1 %v69_v8  ;;  %v141_v19 = vld [vmem:[#allocation2] sm:$0x1] }
   0xe   :  { %144 = vperm.xlu0 %202, %v141_v19   ;;  %v205_v21 = vld [vmem:[%s338_s6] ss:$0 sm:$0xff] }
   0xf   :  { %v140_v25 = vld [vmem:[%s339_s7] sm:$0x1] }
  0x80   :  { %v145_v26 = vpop.permute.xlu0 %144 }
  0x81   :  { %v147_v27 = vperm.slane %v145_v26, 0 }
  0x88   :  { %v65_v10 = vpop.f32.mrf.mxu0 }
  0x89   :  { %v66_v11 = vadd.f32 %v203_v9, %v65_v10 }
  0x8b   :  { %v68_v12 = vmax.f32 %v66_v11, 0.0 }
  0x8d   :  { %195 = vmatmul.msk.f32.vlgmr.msra.gmra.mxu1 %vm76_vm2, %v68_v12 }
 0x10a   :  { %v101_v16 = vpop.f32.mrf.mxu1 }
 0x10b   :  { %v102_v17 = vadd.f32 %v204_v15, %v101_v16 }
 0x10d   :  { %v104_v18 = vmax.f32 %v102_v17, 0.0 }
 0x10f   :  { %197 = vmatmul.msk.f32.vlgmr.msra.gmra.mxu2 %vm111_vm4, %v104_v18 }
 0x192   :  { %v136_v22 = vpop.f32.mrf.mxu2 }
 0x193   :  { %v137_v23 = vadd.f32 %v205_v21, %v136_v22 }
 0x195   :  { %v139_v24 = vmax.f32 %v137_v23, 0.0 }
 0x197   :  { %198 = vmatpush.xpose.msk.msra.mxu3 %vm148_vm5, %v139_v24 }
 0x19a   :  { %199 = vmatmul.msk.f32.vlgmr.msra.gmra.mxu3 %vm148_vm5, %v140_v25 }
 0x21d   :  { %v172_v28 = vpop.f32.mrf.mxu3 }
 0x21e   :  { %v173_v29 = vadd.f32 %v172_v28, %v147_v27 }
 0x220   :  { %176 = vst.msk [vmem:[#allocation3] sm:$0x1] %vm175_vm6, %v173_v29 }
 0x221   :  { %187 = dma.vmem_to_hbm [thread:$0]  %s183_s12, 16, %s185_s15, [#allocation4]  }
 0x222   :  { %230 = dma.done.wait [#allocation4], 16  }
 0x223   :  { %231 = vsyncadd [#allocation4], 4294967280 }
 0x224   :  { %192 = vsyncpa [#allocation4], 1 }

</bundles_post_ra>
